<compile_context>
chip_gen: v7x
topology: tpu7x:2x2x1
jax: 0.10.0
libtpu: 0.0.40
codegen_flags: <defaults>
</compile_context>

<pallas_src>
import math

import jax
import jax.numpy as jnp
from jax.experimental import pallas as pl
from jax.experimental.pallas import tpu as pltpu


def _round_up(x, m):
    return ((x + m - 1) // m) * m


def _pick_tile(n_pad, max_tile, min_grid=1):
    """Largest multiple-of-128 divisor of n_pad that is <= max_tile and leaves
    at least `min_grid` grid steps.  128 always divides n_pad (fallback)."""
    n_blocks = n_pad // 128
    best = 128
    for d in range(1, n_blocks + 1):
        if n_blocks % d != 0:
            continue
        tile = d * 128
        if tile <= max_tile and (n_blocks // d) >= min_grid:
            best = max(best, tile)
    return best


# --------------------- Phase 1: support = x @ W (row-tiled) ---------------------

def _support_kernel(x_ref, w_ref, o_ref):
    o_ref[...] = jnp.dot(
        x_ref[...], w_ref[...], preferred_element_type=jnp.float32
    ).astype(o_ref.dtype)


def _compute_support(x_pad, w_pad, out_dtype, tile_rows):
    n_pad, fin_pad = x_pad.shape
    fout_pad = w_pad.shape[1]
    return pl.pallas_call(
        _support_kernel,
        out_shape=jax.ShapeDtypeStruct((n_pad, fout_pad), out_dtype),
        grid_spec=pltpu.PrefetchScalarGridSpec(
            num_scalar_prefetch=0,
            grid=(n_pad // tile_rows,),
            in_specs=[
                pl.BlockSpec((tile_rows, fin_pad), lambda s: (s, 0)),
                pl.BlockSpec((fin_pad, fout_pad), lambda s: (0, 0)),
            ],
            out_specs=pl.BlockSpec((tile_rows, fout_pad), lambda s: (s, 0)),
        ),
        compiler_params=pltpu.CompilerParams(dimension_semantics=("parallel",)),
    )(x_pad, w_pad)


# ------------- Phase 2: output = adj @ support (+ bias), accumulated ------------

def _make_agg_kernel(tk, resident_support):
    def kernel(adj_ref, sup_ref, b_ref, o_ref):
        k = pl.program_id(1)
        if resident_support:
            # Full support lives in VMEM; slice the k-th contraction stripe.
            start = pl.multiple_of(k * tk, 128)
            sup = sup_ref[pl.ds(start, tk), :]
        else:
            sup = sup_ref[...]
        part = jnp.dot(adj_ref[...], sup, preferred_element_type=jnp.float32)

        @pl.when(k == 0)
        def _():
            # bias row (1, Fout_pad) broadcasts over the tm rows of the block.
            o_ref[...] = b_ref[...] + part

        @pl.when(k != 0)
        def _():
            o_ref[...] += part

    return kernel


def graph_convolution(x, adj, weight, bias=None, *,
                      compute_dtype=jnp.bfloat16, tm_max=512, tk_max=1024):
    """Pallas GCN forward. x:[N,Fin], adj:[N,N], weight:[Fin,Fout], bias:[Fout]|None."""
    n, fin = x.shape
    fout = weight.shape[1]

    f32 = jnp.float32
    cdt = jnp.dtype(compute_dtype)

    # Layout-minimum padding only: 128 lanes on feature / contraction axes.
    n_pad = _round_up(n, 128)
    fin_pad = _round_up(fin, 128)
    fout_pad = _round_up(fout, 128)

    # ---- Phase 1: support = x @ W (f32 MXU inputs, stored at compute width) ----
    x_pad = x.astype(f32)
    if (n_pad, fin_pad) != (n, fin):
        x_pad = jnp.pad(x_pad, ((0, n_pad - n), (0, fin_pad - fin)))
    w_pad = weight.astype(f32)
    if (fin_pad, fout_pad) != (fin, fout):
        w_pad = jnp.pad(w_pad, ((0, fin_pad - fin), (0, fout_pad - fout)))

    t_sup = _pick_tile(n_pad, tm_max, min_grid=2 if n_pad >= 256 else 1)
    support = _compute_support(x_pad, w_pad, cdt, t_sup)

    # ---- Phase 2: output = adj @ support + bias --------------------------------
    # Cast first, then pad at the (narrow) compute width; skip pad when aligned.
    adj_c = adj.astype(cdt)
    if n_pad != n:
        adj_c = jnp.pad(adj_c, ((0, n_pad - n), (0, n_pad - n)))

    b_pad = jnp.zeros((1, fout_pad), f32)
    if bias is not None:
        b_pad = b_pad.at[0, :fout].set(bias.astype(f32))

    tm = _pick_tile(n_pad, tm_max, min_grid=2 if n_pad >= 256 else 1)
    tk = _pick_tile(n_pad, tk_max)

    bpe = cdt.itemsize
    sup_bytes = n_pad * fout_pad * bpe
    # Keep the full support VMEM-resident unless the graph is very large.
    resident_support = sup_bytes <= 8 * 1024 * 1024
    if resident_support:
        sup_spec = pl.BlockSpec((n_pad, fout_pad), lambda i, k: (0, 0))
        sup_vmem = 2 * sup_bytes                      # double-buffered alloc
    else:
        # TODO(synk): for huge graphs, also block-skip instead of re-streaming.
        sup_spec = pl.BlockSpec((tk, fout_pad), lambda i, k: (k, 0))
        sup_vmem = 2 * tk * fout_pad * bpe

    vmem_needed = (2 * tm * tk * bpe                  # adj tile (double-buffered)
                   + sup_vmem                         # support
                   + 2 * tm * fout_pad * 4            # resident f32 output block
                   + 2 * fout_pad * 4)                # bias row
    vmem_limit = None
    if vmem_needed > 12 * 1024 * 1024:
        vmem_limit = min(vmem_needed + vmem_needed // 4, 48 * 1024 * 1024)

    grid = (n_pad // tm, n_pad // tk)
    out_pad = pl.pallas_call(
        _make_agg_kernel(tk, resident_support),
        out_shape=jax.ShapeDtypeStruct((n_pad, fout_pad), f32),
        grid_spec=pltpu.PrefetchScalarGridSpec(
            num_scalar_prefetch=0,
            grid=grid,
            in_specs=[
                pl.BlockSpec((tm, tk), lambda i, k: (i, k)),        # adj tile
                sup_spec,                                           # support
                pl.BlockSpec((1, fout_pad), lambda i, k: (0, 0)),   # bias row
            ],
            out_specs=pl.BlockSpec((tm, fout_pad), lambda i, k: (i, 0)),
        ),
        compiler_params=pltpu.CompilerParams(
            dimension_semantics=("parallel", "arbitrary"),
            vmem_limit_bytes=vmem_limit,
        ),
    )(adj_c, support, b_pad)

    return out_pad[:n, :fout]


def init_params(key, in_feat, out_feat, bias=True):
    """Matches nn.Module init: U(-stdv, stdv), stdv = 1/sqrt(out_feat)."""
    stdv = 1.0 / math.sqrt(out_feat)
    kw, kb = jax.random.split(key)
    weight = jax.random.uniform(kw, (in_feat, out_feat), jnp.float32,
                                minval=-stdv, maxval=stdv)
    b = None
    if bias:
        b = jax.random.uniform(kb, (out_feat,), jnp.float32,
                               minval=-stdv, maxval=stdv)
    return weight, b


if __name__ == "__main__":
    # N not a multiple of 128 -> exercises layout-minimum padding (600 -> 640).
    N, IN_FEAT, OUT_FEAT = 600, 48, 40

    key = jax.random.PRNGKey(0)
    kx, kadj, kparam = jax.random.split(key, 3)

    x = jax.random.normal(kx, (N, IN_FEAT), jnp.float32)

    # Dense row-normalized adjacency with self loops (torch.spmm, densified).
    adj_raw = (jax.random.uniform(kadj, (N, N)) > 0.9).astype(jnp.float32)
    adj_raw = adj_raw + jnp.eye(N, dtype=jnp.float32)
    adj = adj_raw / jnp.sum(adj_raw, axis=1, keepdims=True)

    weight, bias = init_params(kparam, IN_FEAT, OUT_FEAT, bias=True)

    # Pure-JAX reference (full-precision f32 matmuls).
    support_ref = jnp.dot(x, weight, precision=jax.lax.Precision.HIGHEST)
    ref_b = jnp.dot(adj, support_ref, precision=jax.lax.Precision.HIGHEST) + bias[None, :]
    ref_nb = jnp.dot(adj, support_ref, precision=jax.lax.Precision.HIGHEST)

    # 1) Default path: bf16 MXU inputs, f32 accumulation, bias.
    gcn = jax.jit(graph_convolution)
    out = jax.block_until_ready(gcn(x, adj, weight, bias))
    assert out.shape == (N, OUT_FEAT)
    assert jnp.allclose(out, ref_b, atol=1e-2, rtol=1e-2), "bf16 bias path mismatch"

    # 2) f32 path with small tiles to force multi-step k accumulation (5x5 grid).
    gcn_f32 = jax.jit(lambda a, b, c, d: graph_convolution(
        a, b, c, d, compute_dtype=jnp.float32, tm_max=128, tk_max=128))
    out32 = jax.block_until_ready(gcn_f32(x, adj, weight, bias))
    assert jnp.allclose(out32, ref_b, atol=5e-3, rtol=5e-3), "f32 multi-k path mismatch"

    # 3) bias=None path.
    gcn_nb = jax.jit(lambda a, b, c: graph_convolution(a, b, c, None))
    out_nb = jax.block_until_ready(gcn_nb(x, adj, weight))
    assert jnp.allclose(out_nb, ref_nb, atol=1e-2, rtol=1e-2), "no-bias path mismatch"

    print("KERNEL_OK")
</pallas_src>

<mosaic_0001>
module attributes {stable_mosaic.version = 11 : i64} {
  func.func @_support_kernel(%arg0: i32, %arg1: memref<128x128xf32, #tpu.memory_space<vmem>>, %arg2: memref<128x128xf32, #tpu.memory_space<vmem>>, %arg3: memref<128x128xbf16, #tpu.memory_space<vmem>>) attributes {dimension_semantics = [#tpu.dimension_semantics<parallel>], iteration_bounds = array<i64: 5>, scalar_prefetch = 0 : i64, scratch_operands = 0 : i64, tpu.core_type = #tpu.core_type<tc>, window_params = [{transform_indices = @transform_0, window_bounds = array<i64: 128, 128>}, {pipeline_mode = #tpu.pipeline_mode<synchronous>, transform_indices = @transform_1, window_bounds = array<i64: 128, 128>}, {transform_indices = @transform_2, window_bounds = array<i64: 128, 128>}]} {
    %c0 = arith.constant 0 : index
    %c0_0 = arith.constant 0 : index
    %0 = vector.load %arg1[%c0, %c0_0] : memref<128x128xf32, #tpu.memory_space<vmem>>, vector<128x128xf32>
    %c0_1 = arith.constant 0 : index
    %c0_2 = arith.constant 0 : index
    %1 = vector.load %arg2[%c0_1, %c0_2] : memref<128x128xf32, #tpu.memory_space<vmem>>, vector<128x128xf32>
    %cst = arith.constant dense<0.000000e+00> : vector<128x128xf32>
    %2 = tpu.matmul %0, %1, %cst {dimension_numbers = #tpu.dot_dimension_numbers<[1], [0], [0], [1], [0, 0, 1, 1], [], []>} : vector<128x128xf32>, vector<128x128xf32>, vector<128x128xf32> -> vector<128x128xf32>
    %3 = arith.truncf %2 : vector<128x128xf32> to vector<128x128xbf16>
    %c0_3 = arith.constant 0 : index
    %c0_4 = arith.constant 0 : index
    %4 = vector.load %arg3[%c0_3, %c0_4] : memref<128x128xbf16, #tpu.memory_space<vmem>>, vector<128x128xbf16>
    tpu.vector_store %arg3[%c0_3, %c0_4], %3 {strides = array<i32>} : memref<128x128xbf16, #tpu.memory_space<vmem>>, vector<128x128xbf16>,
    return
  }
  func.func @transform_0(%arg0: i32) -> (i32, i32) {
    %c0_i32 = arith.constant 0 : i32
    %c0_i32_0 = arith.constant 0 : i32
    return %arg0, %c0_i32 : i32, i32
  }
  func.func @transform_1(%arg0: i32) -> (i32, i32) {
    %c0_i32 = arith.constant 0 : i32
    %c0_i32_0 = arith.constant 0 : i32
    %c0_i32_1 = arith.constant 0 : i32
    return %c0_i32, %c0_i32_0 : i32, i32
  }
  func.func @transform_2(%arg0: i32) -> (i32, i32) {
    %c0_i32 = arith.constant 0 : i32
    %c0_i32_0 = arith.constant 0 : i32
    return %arg0, %c0_i32 : i32, i32
  }
}

module attributes {stable_mosaic.version = 11 : i64} {
  func.func @kernel(%arg0: i32, %arg1: i32, %arg2: memref<128x640xbf16, #tpu.memory_space<vmem>>, %arg3: memref<640x128xbf16, #tpu.memory_space<vmem>>, %arg4: memref<1x128xf32, #tpu.memory_space<vmem>>, %arg5: memref<128x128xf32, #tpu.memory_space<vmem>>) attributes {dimension_semantics = [#tpu.dimension_semantics<parallel>, #tpu.dimension_semantics<arbitrary>], iteration_bounds = array<i64: 5, 1>, scalar_prefetch = 0 : i64, scratch_operands = 0 : i64, tpu.core_type = #tpu.core_type<tc>, window_params = [{transform_indices = @transform_0, window_bounds = array<i64: 128, 640>}, {pipeline_mode = #tpu.pipeline_mode<synchronous>, transform_indices = @transform_1, window_bounds = array<i64: 640, 128>}, {pipeline_mode = #tpu.pipeline_mode<synchronous>, transform_indices = @transform_2, window_bounds = array<i64: 1, 128>}, {transform_indices = @transform_3, window_bounds = array<i64: 128, 128>}]} {
    %c640_i32 = arith.constant 640 : i32
    %0 = arith.muli %arg1, %c640_i32 : i32
    %1 = tpu.assume_multiple %0, 128 : i32
    %2 = arith.index_cast %1 : i32 to index
    %c0 = arith.constant 0 : index
    %3 = vector.load %arg3[%2, %c0] : memref<640x128xbf16, #tpu.memory_space<vmem>>, vector<640x128xbf16>
    %c0_0 = arith.constant 0 : index
    %c0_1 = arith.constant 0 : index
    %4 = vector.load %arg2[%c0_0, %c0_1] : memref<128x640xbf16, #tpu.memory_space<vmem>>, vector<128x640xbf16>
    %cst = arith.constant dense<0.000000e+00> : vector<128x128xf32>
    %5 = tpu.matmul %4, %3, %cst {dimension_numbers = #tpu.dot_dimension_numbers<[1], [0], [0], [1], [0, 0, 1, 1], [], []>} : vector<128x640xbf16>, vector<640x128xbf16>, vector<128x128xf32> -> vector<128x128xf32>
    %c0_i32 = arith.constant 0 : i32
    %6 = arith.cmpi eq, %arg1, %c0_i32 : i32
    %7 = arith.extui %6 : i1 to i32
    %c0_i32_2 = arith.constant 0 : i32
    %8 = arith.cmpi ne, %7, %c0_i32_2 : i32
    scf.if %8 {
      %c0_5 = arith.constant 0 : index
      %c0_6 = arith.constant 0 : index
      %12 = vector.load %arg4[%c0_5, %c0_6] : memref<1x128xf32, #tpu.memory_space<vmem>>, vector<1x128xf32>
      %13 = vector.broadcast %12 : vector<1x128xf32> to vector<128x128xf32>
      %14 = arith.addf %13, %5 : vector<128x128xf32>
      %c0_7 = arith.constant 0 : index
      %c0_8 = arith.constant 0 : index
      %15 = vector.load %arg5[%c0_7, %c0_8] : memref<128x128xf32, #tpu.memory_space<vmem>>, vector<128x128xf32>
      tpu.vector_store %arg5[%c0_7, %c0_8], %14 {strides = array<i32>} : memref<128x128xf32, #tpu.memory_space<vmem>>, vector<128x128xf32>,
    } else {
    }
    %c0_i32_3 = arith.constant 0 : i32
    %9 = arith.cmpi ne, %arg1, %c0_i32_3 : i32
    %10 = arith.extui %9 : i1 to i32
    %c0_i32_4 = arith.constant 0 : i32
    %11 = arith.cmpi ne, %10, %c0_i32_4 : i32
    scf.if %11 {
      %c0_5 = arith.constant 0 : index
      %c0_6 = arith.constant 0 : index
      %12 = vector.load %arg5[%c0_5, %c0_6] : memref<128x128xf32, #tpu.memory_space<vmem>>, vector<128x128xf32>
      %13 = arith.addf %12, %5 : vector<128x128xf32>
      %c0_7 = arith.constant 0 : index
      %c0_8 = arith.constant 0 : index
      %14 = vector.load %arg5[%c0_7, %c0_8] : memref<128x128xf32, #tpu.memory_space<vmem>>, vector<128x128xf32>
      tpu.vector_store %arg5[%c0_7, %c0_8], %13 {strides = array<i32>} : memref<128x128xf32, #tpu.memory_space<vmem>>, vector<128x128xf32>,
    } else {
    }
    return
  }
  func.func @transform_0(%arg0: i32, %arg1: i32) -> (i32, i32) {
    %c0_i32 = arith.constant 0 : i32
    return %arg0, %arg1 : i32, i32
  }
  func.func @transform_1(%arg0: i32, %arg1: i32) -> (i32, i32) {
    %c0_i32 = arith.constant 0 : i32
    %c0_i32_0 = arith.constant 0 : i32
    %c0_i32_1 = arith.constant 0 : i32
    return %c0_i32, %c0_i32_0 : i32, i32
  }
  func.func @transform_2(%arg0: i32, %arg1: i32) -> (i32, i32) {
    %c0_i32 = arith.constant 0 : i32
    %c0_i32_0 = arith.constant 0 : i32
    %c0_i32_1 = arith.constant 0 : i32
    return %c0_i32, %c0_i32_0 : i32, i32
  }
  func.func @transform_3(%arg0: i32, %arg1: i32) -> (i32, i32) {
    %c0_i32 = arith.constant 0 : i32
    %c0_i32_0 = arith.constant 0 : i32
    return %arg0, %c0_i32 : i32, i32
  }
}

</mosaic_0001>

<bundles_post_ra>
// kernel: graph_convolution.2
= control target key start
LH: loop header
LB: loop body
LE: loop exit
PB: predicated region body
PF: predicated region fallthrough
CT: control target
= control target key end

     0   :  { %s717_s9 = smov 0   ;;  %s804_s0 = inlined_call_operand.vmem [shape: f32[640,128], index: 0, kind: input, shape index: {}]   ;;  %s805_s1 = inlined_call_operand.vmem [shape: f32[128,128], index: 1, kind: input, shape index: {}]   ;;  %s806_s2 = inlined_call_operand.vmem [shape: bf16[640,128], index: 2, kind: output, shape index: {}]  }
   0x1 LB: > { %s460_s10 = sadd.s32 4294967295, %s700_s9   ;;  %p464_p0 = scmp.ge.s32.totalorder %s700_s9, 1  ;;  %s700_s9 = sphi %s717_s9, %s12_s9  }
   0x2   : > { %p113_p1 = scmp.lt.s32.totalorder %s700_s9, 6 }
   0x4   : > { %p114_p2 = pnand %p464_p0, %p113_p1 }
   0x5   : > { %v163_v0 = vld [vmem:[%s805_s1] sm:$0xff] (!%p114_p2)  ;;  %v164_v1 = vld [vmem:[%s805_s1 + $0x8] sm:$0xff] (!%p114_p2)  ;;  %v165_v2 = vld [vmem:[%s805_s1 + $0x10] sm:$0xff] (!%p114_p2)  ;;  %s465_s17 = sshll.u32 (!%p114_p2), %s460_s10, 4 }
   0x6   : > { %117 = sbr.rel (%p114_p2) target bundleno = 269 (0x10d), region = 28  ;;  %v638_v3 = vpack.c.bf16 (!%p114_p2), %v164_v1, %v163_v0  ;;  %v166_v4 = vld [vmem:[%s805_s1 + $0x18] sm:$0xff] (!%p114_p2)  ;;  %p136_p3 = scmp.lt.s32.totalorder (!%p114_p2), %s465_s17, 79  ;;  %v167_v6 = vld [vmem:[%s805_s1 + $0x20] sm:$0xff] (!%p114_p2)  ;;  %v168_v7 = vld [vmem:[%s805_s1 + $0x28] sm:$0xff] (!%p114_p2) }
   0x7   : > { %v642_v5 = vpack.c.bf16 (!%p114_p2), %v166_v4, %v165_v2  ;;  %v646_v8 = vpack.c.bf16 (!%p114_p2), %v168_v7, %v167_v6  ;;  %v169_v9 = vld [vmem:[%s805_s1 + $0x30] sm:$0xff] (!%p114_p2)  ;;  %v170_v10 = vld [vmem:[%s805_s1 + $0x38] sm:$0xff] (!%p114_p2)  ;;  %v171_v14 = vld [vmem:[%s805_s1 + $0x40] sm:$0xff] (!%p114_p2) }
   0x8   : > { %639 = vmatprep.subr.bf16.mxu0 (!%p114_p2), %v638_v3  ;;  %670 = vmatprep.subr.bf16.mxu1 (!%p114_p2), %v638_v3  ;;  %v650_v13 = vpack.c.bf16 (!%p114_p2), %v170_v10, %v169_v9  ;;  %v172_v15 = vld [vmem:[%s805_s1 + $0x48] sm:$0xff] (!%p114_p2)  ;;  %v173_v17 = vld [vmem:[%s805_s1 + $0x50] sm:$0xff] (!%p114_p2)  ;;  %v174_v18 = vld [vmem:[%s805_s1 + $0x58] sm:$0xff] (!%p114_p2) }
   0x9   : > { %641 = vmatpush3.bf16.msra.mxu0 (!%p114_p2), %v638_v3  ;;  %678 = vmatpush3.bf16.msra.mxu1 (!%p114_p2), %v638_v3  ;;  %v654_v16 = vpack.c.bf16 (!%p114_p2), %v172_v15, %v171_v14  ;;  %v658_v19 = vpack.c.bf16 (!%p114_p2), %v174_v18, %v173_v17  ;;  %v175_v20 = vld [vmem:[%s805_s1 + $0x60] sm:$0xff] (!%p114_p2)  ;;  %v176_v21 = vld [vmem:[%s805_s1 + $0x68] sm:$0xff] (!%p114_p2)  ;;  %v177_v23 = vld [vmem:[%s805_s1 + $0x70] sm:$0xff] (!%p114_p2) }
   0xa   : > { %643 = vmatprep.subr.bf16.mxu0 (!%p114_p2), %v642_v5  ;;  %671 = vmatprep.subr.bf16.mxu1 (!%p114_p2), %v642_v5  ;;  %v662_v22 = vpack.c.bf16 (!%p114_p2), %v176_v21, %v175_v20  ;;  %v178_v24 = vld [vmem:[%s805_s1 + $0x78] sm:$0xff] (!%p114_p2) }
   0xb   : > { %v666_v25 = vpack.c.bf16 (!%p114_p2), %v178_v24, %v177_v23 }
   0xd   : > { %s808_s17 = smov (!%p136_p3, %s465_s17), 79  ;;  %645 = vmatpush3.bf16.msra.mxu0 %v642_v5  ;;  %679 = vmatpush3.bf16.msra.mxu1 %v642_v5 }
   0xe   : > { %s466_s24 = sshll.u32 %s808_s17, 3  ;;  %647 = vmatprep.subr.bf16.mxu0 %v646_v8  ;;  %672 = vmatprep.subr.bf16.mxu1 %v646_v8  ;;  %s468_s22 = sshll.u32 %s808_s17, 2 }
   0xf   : > { %s755_s3 = scalar_lea.vmem %s804_s0, %s466_s24  ;;  %s145_s25 = scalar_lea.vmem %s806_s2, %s468_s22 }
  0x10   : > { %v147_v11 = vld [vmem:[%s755_s3] sm:$0xff]  ;;  %v148_v26 = vld [vmem:[%s755_s3 + $0x8] sm:$0xff]  ;;  %v149_v28 = vld [vmem:[%s755_s3 + $0x10] sm:$0xff] }
  0x11   : > { %v155_v12 = vld [vmem:[%s755_s3 + $0x40] sm:$0xff]  ;;  %614 = vmatprep.mubr.f32.mxu0 %v147_v11  ;;  %649 = vmatpush3.bf16.msra.mxu0 %v646_v8  ;;  %v156_v27 = vld [vmem:[%s755_s3 + $0x48] sm:$0xff]  ;;  %v157_v29 = vld [vmem:[%s755_s3 + $0x50] sm:$0xff] }
  0x12   : > { %626 = vmatprep.mubr.f32.mxu1 %v155_v12  ;;  %680 = vmatpush3.bf16.msra.mxu1 %v646_v8  ;;  %v150_v30 = vld [vmem:[%s755_s3 + $0x18] sm:$0xff]  ;;  %v151_v32 = vld [vmem:[%s755_s3 + $0x20] sm:$0xff]  ;;  %v152_v34 = vld [vmem:[%s755_s3 + $0x28] sm:$0xff] }
  0x13   : > { %651 = vmatprep.subr.bf16.mxu0 %v650_v13  ;;  %673 = vmatprep.subr.bf16.mxu1 %v650_v13  ;;  %v158_v31 = vld [vmem:[%s755_s3 + $0x58] sm:$0xff]  ;;  %v159_v33 = vld [vmem:[%s755_s3 + $0x60] sm:$0xff]  ;;  %v160_v35 = vld [vmem:[%s755_s3 + $0x68] sm:$0xff] }
  0x14   : > { %v153_v36 = vld [vmem:[%s755_s3 + $0x30] sm:$0xff]  ;;  %v154_v38 = vld [vmem:[%s755_s3 + $0x38] sm:$0xff] }
  0x15   : > { %653 = vmatpush3.bf16.msra.mxu0 %v650_v13  ;;  %v161_v37 = vld [vmem:[%s755_s3 + $0x70] sm:$0xff]  ;;  %v162_v39 = vld [vmem:[%s755_s3 + $0x78] sm:$0xff] }
  0x16   : > { %681 = vmatpush3.bf16.msra.mxu1 %v650_v13  ;;  %655 = vmatprep.subr.bf16.mxu0 %v654_v16 }
  0x17   : > { %674 = vmatprep.subr.bf16.mxu1 %v654_v16 }
  0x19   : > { %657 = vmatpush3.bf16.msra.mxu0 %v654_v16 }
  0x1a   : > { %682 = vmatpush3.bf16.msra.mxu1 %v654_v16  ;;  %659 = vmatprep.subr.bf16.mxu0 %v658_v19 }
  0x1b   : > { %675 = vmatprep.subr.bf16.mxu1 %v658_v19 }
  0x1d   : > { %661 = vmatpush3.bf16.msra.mxu0 %v658_v19 }
  0x1e   : > { %683 = vmatpush3.bf16.msra.mxu1 %v658_v19  ;;  %663 = vmatprep.subr.bf16.mxu0 %v662_v22 }
  0x1f   : > { %676 = vmatprep.subr.bf16.mxu1 %v662_v22 }
  0x21   : > { %665 = vmatpush3.bf16.msra.mxu0 %v662_v22 }
  0x22   : > { %684 = vmatpush3.bf16.msra.mxu1 %v662_v22  ;;  %667 = vmatprep.subr.bf16.mxu0 %v666_v25 }
  0x23   : > { %677 = vmatprep.subr.bf16.mxu1 %v666_v25 }
  0x25   : > { %669 = vmatpush3.bf16.msra.mxu0 %v666_v25 }
  0x26   : > { %685 = vmatpush3.bf16.msra.mxu1 %v666_v25 }
  0x28   : > { %615 = vmatmul.mubr.f32.vlgmr.msra.gmra.mrb[0].mxu0 %v148_v26 }
  0x29   : > { %627 = vmatmul.mubr.f32.vlgmr.msra.gmra.mrb[0].mxu1 %v156_v27  ;;  %617 = vmatprep.mubr.f32.mxu0 %v149_v28 }
  0x2a   : > { %629 = vmatprep.mubr.f32.mxu1 %v157_v29 }
  0x2c   : > { %618 = vmatmul.mubr.f32.gmra.mrb[2].mxu0 %v150_v30 }
  0x2d   : > { %630 = vmatmul.mubr.f32.gmra.mrb[2].mxu1 %v158_v31  ;;  %620 = vmatprep.mubr.f32.mxu0 %v151_v32 }
  0x2e   : > { %632 = vmatprep.mubr.f32.mxu1 %v159_v33 }
  0x30   : > { %621 = vmatmul.mubr.f32.gmra.mrb[4].mxu0 %v152_v34 }
  0x31   : > { %633 = vmatmul.mubr.f32.gmra.mrb[4].mxu1 %v160_v35  ;;  %623 = vmatprep.mubr.f32.mxu0 %v153_v36 }
  0x32   : > { %635 = vmatprep.mubr.f32.mxu1 %v161_v37 }
  0x34   : > { %624 = vmatmul.mubr.f32.gmra.mrb[6].mxu0 %v154_v38 }
  0x35   : > { %636 = vmatmul.mubr.f32.gmra.mrb[6].mxu1 %v162_v39 }
  0xfb   : > { %v616_v40 = vpop.f32.mrb[0].mxu0 }
  0xfc   : > { %v628_v41 = vpop.f32.mrb[0].mxu1  ;;  %v245_v42 = vpop.f32.mrb[1].mxu0 }
  0xfd   : > { %v285_v43 = vpop.f32.mrb[1].mxu1  ;;  %v506_v44 = vpack.c.bf16 %v616_v40, %v245_v42 }
  0xfe   : > { %v526_v45 = vpack.c.bf16 %v628_v41, %v285_v43 }
  0xff   : > { %507 = vst [vmem:[%s145_s25] sm:$0xff] %v506_v44   ;;  %v619_v46 = vpop.f32.mrb[2].mxu0 }
 0x100   : > { %546 = vst [vmem:[%s145_s25 + $0x20] sm:$0xff] %v526_v45   ;;  %v631_v47 = vpop.f32.mrb[2].mxu1  ;;  %v255_v48 = vpop.f32.mrb[3].mxu0 }
 0x101   : > { %v295_v49 = vpop.f32.mrb[3].mxu1  ;;  %v511_v50 = vpack.c.bf16 %v619_v46, %v255_v48 }
 0x102   : > { %v531_v51 = vpack.c.bf16 %v631_v47, %v295_v49 }
 0x103   : > { %543 = vst [vmem:[%s145_s25 + $0x8] sm:$0xff] %v511_v50   ;;  %v622_v52 = vpop.f32.mrb[4].mxu0 }
 0x104   : > { %547 = vst [vmem:[%s145_s25 + $0x28] sm:$0xff] %v531_v51   ;;  %v634_v53 = vpop.f32.mrb[4].mxu1  ;;  %v265_v54 = vpop.f32.mrb[5].mxu0 }
 0x105   : > { %v305_v55 = vpop.f32.mrb[5].mxu1  ;;  %v516_v56 = vpack.c.bf16 %v622_v52, %v265_v54 }
 0x106   : > { %v536_v57 = vpack.c.bf16 %v634_v53, %v305_v55 }
 0x107   : > { %544 = vst [vmem:[%s145_s25 + $0x10] sm:$0xff] %v516_v56   ;;  %v625_v58 = vpop.f32.mrb[6].mxu0 }
 0x108   : > { %548 = vst [vmem:[%s145_s25 + $0x30] sm:$0xff] %v536_v57   ;;  %v637_v59 = vpop.f32.mrb[6].mxu1  ;;  %v275_v60 = vpop.f32.mrb[7].mxu0 }
 0x109   : > { %v315_v61 = vpop.f32.mrb[7].mxu1  ;;  %v521_v62 = vpack.c.bf16 %v625_v58, %v275_v60 }
 0x10a   : > { %v541_v63 = vpack.c.bf16 %v637_v59, %v315_v61 }
 0x10b   : > { %545 = vst [vmem:[%s145_s25 + $0x18] sm:$0xff] %v521_v62  }
 0x10c   : > { %549 = vst [vmem:[%s145_s25 + $0x38] sm:$0xff] %v541_v63  }
 0x10d PF: > { %s12_s9 = sadd.s32 1, %s700_s9  }
 0x10e   : > { %p9_p4 = scmp.ge.s32.totalorder %s12_s9, 7  }
 0x110   :  { %11 = sbr.rel (!%p9_p4) target bundleno = 1 (0x1), region = 58 }

// kernel: graph_convolution.3
= control target key start
LH: loop header
LB: loop body
LE: loop exit
PB: predicated region body
PF: predicated region fallthrough
CT: control target
= control target key end

     0   :  { %s1695_s12 = smov 0   ;;  %s1697_s13 = smov 0   ;;  %s1948_s0 = inlined_call_operand.vmem [shape: bf16[640,640], index: 0, kind: input, shape index: {}]   ;;  %s1949_s1 = inlined_call_operand.vmem [shape: bf16[640,128], index: 1, kind: input, shape index: {}]   ;;  %s1950_s2 = inlined_call_operand.vmem [shape: f32[1,128], index: 2, kind: input, shape index: {}]   ;;  %s1951_s3 = inlined_call_operand.vmem [shape: f32[640,128], index: 3, kind: output, shape index: {}]  }
   0x1   :  { %s1699_s14 = smov 0  }
   0x2 LB: > { %s25_s15 = sadd.s32 1, %s1669_s13  ;;  %p1250_p0 = scmp.ge.s32.totalorder %s1673_s14, 1  ;;  %s1673_s14 = sphi %s1699_s14, %s13_s14   ;;  %s1669_s13 = sphi %s1697_s13, %s1953_s13   ;;  %s1665_s12 = sphi %s1695_s12, %s1952_s12  }
   0x3   : > { %p27_p1 = scmp.ge.s32.totalorder %s25_s15, 5  ;;  %p158_p2 = scmp.lt.s32.totalorder %s1673_s14, 6 }
   0x5   : > { %s1955_s15 = smov (%p27_p1, %s25_s15), 0  ;;  %p159_p3 = pnand %p1250_p0, %p158_p2 }
   0x6   : > { %v1555_v0 = vld [vmem:[%s1949_s1 + $0x40] sm:$0xff] (!%p159_p3)   ;;  %v1559_v4 = vld [vmem:[%s1949_s1 + $0x48] sm:$0xff] (!%p159_p3)   ;;  %v1563_v8 = vld [vmem:[%s1949_s1 + $0x50] sm:$0xff] (!%p159_p3)   ;;  %s1251_s23 = sshll.u32 (!%p159_p3), %s1665_s12, 4 }
   0x7   : > { %162 = sbr.rel (%p159_p3) target bundleno = 333 (0x14d), region = 32  ;;  %v1556_v1 = vld [vmem:[%s1949_s1 + $0xc0] sm:$0xff] (!%p159_p3)   ;;  %1338 = vmatprep.subr.bf16.mxu0 (!%p159_p3), %v1555_v0  ;;  %v1560_v5 = vld [vmem:[%s1949_s1 + $0xc8] sm:$0xff] (!%p159_p3)   ;;  %v1564_v9 = vld [vmem:[%s1949_s1 + $0xd0] sm:$0xff] (!%p159_p3)   ;;  %p189_p4 = scmp.lt.s32.totalorder (!%p159_p3), %s1251_s23, 79 }
   0x8   : > { %v1557_v2 = vld [vmem:[%s1949_s1] sm:$0xff] (!%p159_p3)   ;;  %1402 = vmatprep.subr.bf16.mxu1 (!%p159_p3), %v1556_v1  ;;  %v1561_v6 = vld [vmem:[%s1949_s1 + $0x8] sm:$0xff] (!%p159_p3)   ;;  %v1565_v10 = vld [vmem:[%s1949_s1 + $0x10] sm:$0xff] (!%p159_p3)  }
   0x9   : > { %v1558_v3 = vld [vmem:[%s1949_s1 + $0x80] sm:$0xff] (!%p159_p3)   ;;  %1339 = vmatpush3.bf16.msra.mxu0 (!%p159_p3), %v1557_v2  ;;  %v1562_v7 = vld [vmem:[%s1949_s1 + $0x88] sm:$0xff] (!%p159_p3)   ;;  %v1566_v11 = vld [vmem:[%s1949_s1 + $0x90] sm:$0xff] (!%p159_p3)  }
   0xa   : > { %1403 = vmatpush3.bf16.msra.mxu1 (!%p159_p3), %v1558_v3  ;;  %1340 = vmatprep.subr.bf16.mxu0 (!%p159_p3), %v1559_v4  ;;  %v1567_v12 = vld [vmem:[%s1949_s1 + $0x58] sm:$0xff] (!%p159_p3)   ;;  %v1571_v16 = vld [vmem:[%s1949_s1 + $0x60] sm:$0xff] (!%p159_p3)   ;;  %v1575_v20 = vld [vmem:[%s1949_s1 + $0x68] sm:$0xff] (!%p159_p3)  }
   0xb   : > { %1404 = vmatprep.subr.bf16.mxu1 (!%p159_p3), %v1560_v5  ;;  %v1568_v13 = vld [vmem:[%s1949_s1 + $0xd8] sm:$0xff] (!%p159_p3)   ;;  %v1572_v17 = vld [vmem:[%s1949_s1 + $0xe0] sm:$0xff] (!%p159_p3)   ;;  %v1576_v21 = vld [vmem:[%s1949_s1 + $0xe8] sm:$0xff] (!%p159_p3)  }
   0xc   : > { %v1569_v14 = vld [vmem:[%s1949_s1 + $0x18] sm:$0xff] (!%p159_p3)   ;;  %v1573_v18 = vld [vmem:[%s1949_s1 + $0x20] sm:$0xff] (!%p159_p3)   ;;  %v1577_v22 = vld [vmem:[%s1949_s1 + $0x28] sm:$0xff] (!%p159_p3)  }
   0xd   : > { %1341 = vmatpush3.bf16.msra.mxu0 (!%p159_p3), %v1561_v6  ;;  %v1570_v15 = vld [vmem:[%s1949_s1 + $0x98] sm:$0xff] (!%p159_p3)   ;;  %v1574_v19 = vld [vmem:[%s1949_s1 + $0xa0] sm:$0xff] (!%p159_p3)   ;;  %v1578_v23 = vld [vmem:[%s1949_s1 + $0xa8] sm:$0xff] (!%p159_p3)  }
   0xe   : > { %1405 = vmatpush3.bf16.msra.mxu1 %v1562_v7  ;;  %1342 = vmatprep.subr.bf16.mxu0 %v1563_v8  ;;  %s1957_s23 = smov (!%p189_p4, %s1251_s23), 79  ;;  %v1579_v24 = vld [vmem:[%s1949_s1 + $0x70] sm:$0xff]   ;;  %v1583_v28 = vld [vmem:[%s1949_s1 + $0x78] sm:$0xff]   ;;  %v1593_v36 = vld [vmem:[%s1949_s1 + $0x100] sm:$0xff]  }
   0xf   : > { %1406 = vmatprep.subr.bf16.mxu1 %v1564_v9  ;;  %v1580_v25 = vld [vmem:[%s1949_s1 + $0xf0] sm:$0xff]   ;;  %s1530_s22 = smul.u32 20, %s1957_s23  ;;  %v1584_v29 = vld [vmem:[%s1949_s1 + $0xf8] sm:$0xff]   ;;  %v1600_v39 = vld [vmem:[%s1949_s1 + $0x108] sm:$0xff]   ;;  %s1254_s12 = sshll.u32 %s1957_s23, 3 }
  0x10   : > { %v1581_v26 = vld [vmem:[%s1949_s1 + $0x30] sm:$0xff]   ;;  %v1585_v30 = vld [vmem:[%s1949_s1 + $0x38] sm:$0xff]   ;;  %v1621_v50 = vld [vmem:[%s1949_s1 + $0x120] sm:$0xff]   ;;  %s1912_s9 = scalar_lea.vmem %s1951_s3, %s1254_s12 }
  0x11   : > { %1343 = vmatpush3.bf16.msra.mxu0 %v1565_v10  ;;  %v1582_v27 = vld [vmem:[%s1949_s1 + $0xb0] sm:$0xff]   ;;  %s1812_s6 = scalar_lea.vmem %s1948_s0, %s1530_s22  ;;  %v1586_v31 = vld [vmem:[%s1949_s1 + $0xb8] sm:$0xff]   ;;  %v1628_v51 = vld [vmem:[%s1949_s1 + $0x128] sm:$0xff]  }
  0x12   : > { %1407 = vmatpush3.bf16.msra.mxu1 %v1566_v11  ;;  %1344 = vmatprep.subr.bf16.mxu0 %v1567_v12  ;;  %v1587_v32 = vld [vmem:[%s1812_s6] ss:$20 sps:$4 sm:$0xff]   ;;  %v1589_v33 = vld [vmem:[%s1812_s6 + $0x4] ss:$20 sps:$4 sm:$0xff]   ;;  %v1590_v34 = vld [vmem:[%s1812_s6 + $0x8] ss:$20 sps:$4 sm:$0xff]  }
  0x13   : > { %1408 = vmatprep.subr.bf16.mxu1 %v1568_v13  ;;  %v1592_v35 = vld [vmem:[%s1812_s6 + $0xc] ss:$20 sps:$4 sm:$0xff]   ;;  %819 = vmatprep.mubr.bf16.mxu0 %v1589_v33  ;;  %v1596_v38 = vld [vmem:[%s1812_s6 + $0x34] ss:$20 sps:$4 sm:$0xff]   ;;  %v1599_v41 = vld [vmem:[%s1812_s6 + $0x30] ss:$20 sps:$4 sm:$0xff]  }
  0x14   : > { %916 = vmatprep.mubr.bf16.mxu1 %v1592_v35  ;;  %v1594_v37 = vld [vmem:[%s1812_s6 + $0x2c] ss:$20 sps:$4 sm:$0xff]   ;;  %v1598_v40 = vld [vmem:[%s1812_s6 + $0x28] ss:$20 sps:$4 sm:$0xff]   ;;  %v1607_v44 = vld [vmem:[%s1949_s1 + $0x110] sm:$0xff]  }
  0x15   : > { %1345 = vmatpush3.bf16.msra.mxu0 %v1569_v14  ;;  %v1601_v42 = vld [vmem:[%s1812_s6 + $0x54] ss:$20 sps:$4 sm:$0xff]   ;;  %v1603_v43 = vld [vmem:[%s1812_s6 + $0x5c] ss:$20 sps:$4 sm:$0xff]   ;;  %v1606_v47 = vld [vmem:[%s1812_s6 + $0x58] ss:$20 sps:$4 sm:$0xff]  }
  0x16   : > { %1409 = vmatpush3.bf16.msra.mxu1 %v1570_v15  ;;  %1346 = vmatprep.subr.bf16.mxu0 %v1571_v16  ;;  %v1614_v45 = vld [vmem:[%s1949_s1 + $0x118] sm:$0xff]   ;;  %v1605_v46 = vld [vmem:[%s1812_s6 + $0x50] ss:$20 sps:$4 sm:$0xff]   ;;  %v1613_v53 = vld [vmem:[%s1812_s6 + $0x80] ss:$20 sps:$4 sm:$0xff]  }
  0x17   : > { %1410 = vmatprep.subr.bf16.mxu1 %v1572_v17  ;;  %v1608_v48 = vld [vmem:[%s1812_s6 + $0x7c] ss:$20 sps:$4 sm:$0xff]   ;;  %v1610_v49 = vld [vmem:[%s1812_s6 + $0x84] ss:$20 sps:$4 sm:$0xff]   ;;  %v1617_v56 = vld [vmem:[%s1812_s6 + $0xac] ss:$20 sps:$4 sm:$0xff]  }
  0x18   : > { %v1612_v52 = vld [vmem:[%s1812_s6 + $0x78] ss:$20 sps:$4 sm:$0xff]   ;;  %v1635_v55 = vld [vmem:[%s1949_s1 + $0x130] sm:$0xff]   ;;  %v1620_v59 = vld [vmem:[%s1812_s6 + $0xa8] ss:$20 sps:$4 sm:$0xff]  }
  0x19   : > { %1347 = vmatpush3.bf16.msra.mxu0 %v1573_v18  ;;  %v1615_v54 = vld [vmem:[%s1812_s6 + $0xa4] ss:$20 sps:$4 sm:$0xff]   ;;  %v1619_v58 = vld [vmem:[%s1812_s6 + $0xa0] ss:$20 sps:$4 sm:$0xff]   ;;  %v1626_v62 = vld [vmem:[%s1812_s6 + $0xc8] ss:$20 sps:$4 sm:$0xff]  }
  0x1a   : > { %1411 = vmatpush3.bf16.msra.mxu1 %v1574_v19  ;;  %1348 = vmatprep.subr.bf16.mxu0 %v1575_v20  ;;  %v1642_v57 = vld [vmem:[%s1949_s1 + $0x138] sm:$0xff]   ;;  %v1622_v60 = vld [vmem:[%s1812_s6 + $0xcc] ss:$20 sps:$4 sm:$0xff]   ;;  %v1624_v61 = vld [vmem:[%s1812_s6 + $0xd4] ss:$20 sps:$4 sm:$0xff]  }
  0x1b   : > { %1412 = vmatprep.subr.bf16.mxu1 %v1576_v21  ;;  %v1627_v63 = vld [vmem:[%s1812_s6 + $0xd0] ss:$20 sps:$4 sm:$0xff]   ;;  %v1629_v0 = vld [vmem:[%s1812_s6 + $0xf4] ss:$20 sps:$4 sm:$0xff]   ;;  %v1634_v3 = vld [vmem:[%s1812_s6 + $0xf8] ss:$20 sps:$4 sm:$0xff]  }
  0x1c   : > { %v1631_v1 = vld [vmem:[%s1812_s6 + $0xfc] ss:$20 sps:$4 sm:$0xff]   ;;  %v1638_v5 = vld [vmem:[%s1812_s6 + $0x124] ss:$20 sps:$4 sm:$0xff]   ;;  %v1641_v7 = vld [vmem:[%s1812_s6 + $0x120] ss:$20 sps:$4 sm:$0xff]  }
  0x1d   : > { %1349 = vmatpush3.bf16.msra.mxu0 %v1577_v22  ;;  %v1633_v2 = vld [vmem:[%s1812_s6 + $0xf0] ss:$20 sps:$4 sm:$0xff]   ;;  %v1640_v6 = vld [vmem:[%s1812_s6 + $0x118] ss:$20 sps:$4 sm:$0xff]   ;;  %v1647_v12 = vld [vmem:[%s1812_s6 + $0x60] ss:$20 sps:$4 sm:$0xff]  }
  0x1e   : > { %1413 = vmatpush3.bf16.msra.mxu1 %v1578_v23  ;;  %1350 = vmatprep.subr.bf16.mxu0 %v1579_v24  ;;  %v1636_v4 = vld [vmem:[%s1812_s6 + $0x11c] ss:$20 sps:$4 sm:$0xff]   ;;  %v1645_v10 = vld [vmem:[%s1812_s6 + $0x38] ss:$20 sps:$4 sm:$0xff]   ;;  %v1648_v13 = vld [vmem:[%s1812_s6 + $0x100] ss:$20 sps:$4 sm:$0xff]  }
  0x1f   : > { %1414 = vmatprep.subr.bf16.mxu1 %v1580_v25  ;;  %v1643_v8 = vld [vmem:[%s1812_s6 + $0x10] ss:$20 sps:$4 sm:$0xff]   ;;  %v1646_v11 = vld [vmem:[%s1812_s6 + $0xd8] ss:$20 sps:$4 sm:$0xff]   ;;  %v1649_v14 = vld [vmem:[%s1812_s6 + $0x88] ss:$20 sps:$4 sm:$0xff]  }
  0x20   : > { %v1644_v9 = vld [vmem:[%s1812_s6 + $0xb0] ss:$20 sps:$4 sm:$0xff]   ;;  %v1650_v15 = vld [vmem:[%s1812_s6 + $0x128] ss:$20 sps:$4 sm:$0xff]  }
  0x21   : > { %1351 = vmatpush3.bf16.msra.mxu0 %v1581_v26 }
  0x22   : > { %1415 = vmatpush3.bf16.msra.mxu1 %v1582_v27  ;;  %1352 = vmatprep.subr.bf16.mxu0 %v1583_v28 }
  0x23   : > { %1416 = vmatprep.subr.bf16.mxu1 %v1584_v29 }
  0x25   : > { %1353 = vmatpush3.bf16.msra.mxu0 %v1585_v30 }
  0x26   : > { %1417 = vmatpush3.bf16.msra.mxu1 %v1586_v31  ;;  %1482 = vmatprep.subr.bf16.mxu0 %v1593_v36 }
  0x27   : > { %1514 = vmatprep.subr.bf16.mxu1 %v1593_v36 }
  0x28   : > { %820 = vmatmul.mubr.bf16.vlgmr.msra.gmra.mrb[0].mxu0 %v1587_v32 }
  0x29   : > { %917 = vmatmul.mubr.bf16.vlgmr.msra.gmra.mrb[0].mxu1 %v1590_v34  ;;  %1483 = vmatpush3.bf16.msra.mxu0 %v1593_v36 }
  0x2a   : > { %1522 = vmatpush3.bf16.msra.mxu1 %v1593_v36  ;;  %827 = vmatprep.mubr.bf16.mxu0 %v1594_v37 }
  0x2b   : > { %924 = vmatprep.mubr.bf16.mxu1 %v1596_v38  ;;  %1484 = vmatprep.subr.bf16.mxu0 %v1600_v39 }
  0x2c   : > { %1515 = vmatprep.subr.bf16.mxu1 %v1600_v39 }
  0x2d   : > { %1485 = vmatpush3.bf16.msra.mxu0 %v1600_v39 }
  0x2e   : > { %1523 = vmatpush3.bf16.msra.mxu1 %v1600_v39  ;;  %1486 = vmatprep.subr.bf16.mxu0 %v1607_v44 }
  0x2f   : > { %1516 = vmatprep.subr.bf16.mxu1 %v1607_v44 }
  0x30   : > { %828 = vmatmul.mubr.bf16.gmra.mrb[4].mxu0 %v1598_v40 }
  0x31   : > { %925 = vmatmul.mubr.bf16.gmra.mrb[4].mxu1 %v1599_v41  ;;  %835 = vmatprep.mubr.bf16.mxu0 %v1601_v42 }
  0x32   : > { %932 = vmatprep.mubr.bf16.mxu1 %v1603_v43  ;;  %1487 = vmatpush3.bf16.msra.mxu0 %v1607_v44 }
  0x33   : > { %1524 = vmatpush3.bf16.msra.mxu1 %v1607_v44  ;;  %1488 = vmatprep.subr.bf16.mxu0 %v1614_v45 }
  0x34   : > { %1517 = vmatprep.subr.bf16.mxu1 %v1614_v45 }
  0x36   : > { %1489 = vmatpush3.bf16.msra.mxu0 %v1614_v45 }
  0x37   : > { %1525 = vmatpush3.bf16.msra.mxu1 %v1614_v45  ;;  %1490 = vmatprep.subr.bf16.mxu0 %v1621_v50 }
  0x38   : > { %836 = vmatmul.mubr.bf16.gmra.mrb[8].mxu0 %v1605_v46  ;;  %1518 = vmatprep.subr.bf16.mxu1 %v1621_v50 }
  0x39   : > { %933 = vmatmul.mubr.bf16.gmra.mrb[8].mxu1 %v1606_v47  ;;  %843 = vmatprep.mubr.bf16.mxu0 %v1608_v48 }
  0x3a   : > { %940 = vmatprep.mubr.bf16.mxu1 %v1610_v49  ;;  %1491 = vmatpush3.bf16.msra.mxu0 %v1621_v50 }
  0x3b   : > { %1526 = vmatpush3.bf16.msra.mxu1 %v1621_v50  ;;  %1492 = vmatprep.subr.bf16.mxu0 %v1628_v51 }
  0x3c   : > { %1519 = vmatprep.subr.bf16.mxu1 %v1628_v51 }
  0x3e   : > { %1493 = vmatpush3.bf16.msra.mxu0 %v1628_v51 }
  0x3f   : > { %1527 = vmatpush3.bf16.msra.mxu1 %v1628_v51  ;;  %1494 = vmatprep.subr.bf16.mxu0 %v1635_v55 }
  0x40   : > { %844 = vmatmul.mubr.bf16.gmra.mrb[12].mxu0 %v1612_v52  ;;  %1520 = vmatprep.subr.bf16.mxu1 %v1635_v55 }
  0x41   : > { %941 = vmatmul.mubr.bf16.gmra.mrb[12].mxu1 %v1613_v53  ;;  %851 = vmatprep.mubr.bf16.mxu0 %v1615_v54 }
  0x42   : > { %948 = vmatprep.mubr.bf16.mxu1 %v1617_v56  ;;  %1495 = vmatpush3.bf16.msra.mxu0 %v1635_v55 }
  0x43   : > { %1528 = vmatpush3.bf16.msra.mxu1 %v1635_v55  ;;  %1496 = vmatprep.subr.bf16.mxu0 %v1642_v57 }
  0x44   : > { %1521 = vmatprep.subr.bf16.mxu1 %v1642_v57 }
  0x46   : > { %1497 = vmatpush3.bf16.msra.mxu0 %v1642_v57 }
  0x47   : > { %1529 = vmatpush3.bf16.msra.mxu1 %v1642_v57 }
  0x48   : > { %852 = vmatmul.mubr.bf16.gmra.mrb[16].mxu0 %v1619_v58 }
  0x49   : > { %949 = vmatmul.mubr.bf16.gmra.mrb[16].mxu1 %v1620_v59  ;;  %859 = vmatprep.mubr.bf16.mxu0 %v1622_v60 }
  0x4a   : > { %956 = vmatprep.mubr.bf16.mxu1 %v1624_v61 }
  0x50   : > { %860 = vmatmul.mubr.bf16.gmra.mrb[20].mxu0 %v1626_v62 }
  0x51   : > { %957 = vmatmul.mubr.bf16.gmra.mrb[20].mxu1 %v1627_v63  ;;  %867 = vmatprep.mubr.bf16.mxu0 %v1629_v0 }
  0x52   : > { %964 = vmatprep.mubr.bf16.mxu1 %v1631_v1 }
  0x58   : > { %868 = vmatmul.mubr.bf16.gmra.mrb[24].mxu0 %v1633_v2 }
  0x59   : > { %965 = vmatmul.mubr.bf16.gmra.mrb[24].mxu1 %v1634_v3  ;;  %875 = vmatprep.mubr.bf16.mxu0 %v1636_v4 }
  0x5a   : > { %972 = vmatprep.mubr.bf16.mxu1 %v1638_v5 }
  0x60   : > { %876 = vmatmul.mubr.bf16.gmra.mrb[28].mxu0 %v1640_v6 }
  0x61   : > { %973 = vmatmul.mubr.bf16.gmra.mrb[28].mxu1 %v1641_v7  ;;  %1498 = vmatprep.mubr.bf16.mxu0 %v1643_v8 }
  0x62   : > { %1506 = vmatprep.mubr.bf16.mxu1 %v1644_v9 }
  0x68   : > { %1499 = vmatmul.mubr.bf16.vlgmr.msra.gmra.mrb[32].mxu0 %v1645_v10 }
  0x69   : > { %1507 = vmatmul.mubr.bf16.vlgmr.msra.gmra.mrb[32].mxu1 %v1646_v11  ;;  %1502 = vmatprep.mubr.bf16.mxu0 %v1647_v12 }
  0x6a   : > { %1510 = vmatprep.mubr.bf16.mxu1 %v1648_v13 }
  0x70   : > { %1503 = vmatmul.mubr.bf16.gmra.mrb[36].mxu0 %v1649_v14 }
  0x71   : > { %1511 = vmatmul.mubr.bf16.gmra.mrb[36].mxu1 %v1650_v15 }
  0xfb   : > { %v1354_v16 = vpop.f32.mrb[0].mxu0 }
  0xfc   : > { %v1418_v17 = vpop.f32.mrb[0].mxu1  ;;  %v1355_v18 = vpop.f32.mrb[1].mxu0 }
  0xfd   : > { %v1356_v19 = vadd.f32 %v1355_v18, %v1354_v16  ;;  %v1419_v20 = vpop.f32.mrb[1].mxu1  ;;  %v1357_v21 = vpop.f32.mrb[2].mxu0 }
  0xfe   : > { %v1420_v22 = vadd.f32 %v1419_v20, %v1418_v17  ;;  %v1421_v23 = vpop.f32.mrb[2].mxu1  ;;  %v1358_v24 = vpop.f32.mrb[3].mxu0 }
  0xff   : > { %v1359_v25 = vadd.f32 %v1358_v24, %v1357_v21  ;;  %v1422_v26 = vpop.f32.mrb[3].mxu1 }
 0x100   : > { %v1423_v27 = vadd.f32 %v1422_v26, %v1421_v23  ;;  %v1884_v28 = vadd.f32 %v1420_v22, %v1356_v19 }
 0x102   : > { %v1886_v29 = vadd.f32 %v1423_v27, %v1359_v25 }
 0x103   : > { %v1360_v30 = vpop.f32.mrb[4].mxu0 }
 0x104   : > { %v1424_v31 = vpop.f32.mrb[4].mxu1  ;;  %v1361_v32 = vpop.f32.mrb[5].mxu0 }
 0x105   : > { %v1362_v33 = vadd.f32 %v1361_v32, %v1360_v30  ;;  %v1425_v34 = vpop.f32.mrb[5].mxu1  ;;  %v1363_v35 = vpop.f32.mrb[6].mxu0 }
 0x106   : > { %v1426_v36 = vadd.f32 %v1425_v34, %v1424_v31  ;;  %v1427_v37 = vpop.f32.mrb[6].mxu1  ;;  %v1364_v38 = vpop.f32.mrb[7].mxu0 }
 0x107   : > { %v1365_v39 = vadd.f32 %v1364_v38, %v1363_v35  ;;  %v1428_v40 = vpop.f32.mrb[7].mxu1 }
 0x108   : > { %v1429_v41 = vadd.f32 %v1428_v40, %v1427_v37  ;;  %v1888_v42 = vadd.f32 %v1426_v36, %v1362_v33 }
 0x10a   : > { %v1890_v43 = vadd.f32 %v1429_v41, %v1365_v39 }
 0x10b   : > { %v1366_v44 = vpop.f32.mrb[8].mxu0 }
 0x10c   : > { %v1430_v45 = vpop.f32.mrb[8].mxu1  ;;  %v1367_v46 = vpop.f32.mrb[9].mxu0 }
 0x10d   : > { %v1368_v47 = vadd.f32 %v1367_v46, %v1366_v44  ;;  %v1431_v48 = vpop.f32.mrb[9].mxu1  ;;  %v1369_v49 = vpop.f32.mrb[10].mxu0 }
 0x10e   : > { %v1432_v50 = vadd.f32 %v1431_v48, %v1430_v45  ;;  %v1433_v51 = vpop.f32.mrb[10].mxu1  ;;  %v1370_v52 = vpop.f32.mrb[11].mxu0 }
 0x10f   : > { %v1371_v53 = vadd.f32 %v1370_v52, %v1369_v49  ;;  %v1434_v54 = vpop.f32.mrb[11].mxu1 }
 0x110   : > { %v1435_v55 = vadd.f32 %v1434_v54, %v1433_v51  ;;  %v1892_v56 = vadd.f32 %v1432_v50, %v1368_v47 }
 0x112   : > { %v1894_v57 = vadd.f32 %v1435_v55, %v1371_v53 }
 0x113   : > { %v1372_v58 = vpop.f32.mrb[12].mxu0 }
 0x114   : > { %v1436_v59 = vpop.f32.mrb[12].mxu1  ;;  %v1373_v60 = vpop.f32.mrb[13].mxu0 }
 0x115   : > { %v1374_v61 = vadd.f32 %v1373_v60, %v1372_v58  ;;  %v1437_v62 = vpop.f32.mrb[13].mxu1  ;;  %v1375_v63 = vpop.f32.mrb[14].mxu0 }
 0x116   : > { %v1438_v0 = vadd.f32 %v1437_v62, %v1436_v59  ;;  %v1439_v1 = vpop.f32.mrb[14].mxu1  ;;  %v1376_v2 = vpop.f32.mrb[15].mxu0 }
 0x117   : > { %v1377_v3 = vadd.f32 %v1376_v2, %v1375_v63  ;;  %v1440_v4 = vpop.f32.mrb[15].mxu1 }
 0x118   : > { %v1441_v5 = vadd.f32 %v1440_v4, %v1439_v1  ;;  %v1896_v6 = vadd.f32 %v1438_v0, %v1374_v61 }
 0x11a   : > { %v1898_v7 = vadd.f32 %v1441_v5, %v1377_v3 }
 0x11b   : > { %v1378_v8 = vpop.f32.mrb[16].mxu0 }
 0x11c   : > { %v1442_v9 = vpop.f32.mrb[16].mxu1  ;;  %v1379_v10 = vpop.f32.mrb[17].mxu0 }
 0x11d   : > { %v1380_v11 = vadd.f32 %v1379_v10, %v1378_v8  ;;  %v1443_v12 = vpop.f32.mrb[17].mxu1  ;;  %v1381_v13 = vpop.f32.mrb[18].mxu0 }
 0x11e   : > { %v1444_v14 = vadd.f32 %v1443_v12, %v1442_v9  ;;  %v1445_v15 = vpop.f32.mrb[18].mxu1  ;;  %v1382_v16 = vpop.f32.mrb[19].mxu0  ;;  %v1335_v9 = vld [vmem:[%s1950_s2] ss:$0 sm:$0xff] }
 0x11f   : > { %v1383_v17 = vadd.f32 %v1382_v16, %v1381_v13  ;;  %v1446_v18 = vpop.f32.mrb[19].mxu1 }
 0x120   : > { %v1447_v19 = vadd.f32 %v1446_v18, %v1445_v15  ;;  %v951_v20 = vadd.f32 %v1444_v14, %v1380_v11 }
 0x122   : > { %v1900_v21 = vadd.f32 %v1447_v19, %v1383_v17 }
 0x123   : > { %v1384_v22 = vpop.f32.mrb[20].mxu0 }
 0x124   : > { %v1448_v23 = vpop.f32.mrb[20].mxu1  ;;  %v1385_v24 = vpop.f32.mrb[21].mxu0 }
 0x125   : > { %v1386_v25 = vadd.f32 %v1385_v24, %v1384_v22  ;;  %v1449_v26 = vpop.f32.mrb[21].mxu1  ;;  %v1387_v27 = vpop.f32.mrb[22].mxu0 }
 0x126   : > { %v1450_v30 = vadd.f32 %v1449_v26, %v1448_v23  ;;  %v1451_v31 = vpop.f32.mrb[22].mxu1  ;;  %v1388_v32 = vpop.f32.mrb[23].mxu0 }
 0x127   : > { %v1389_v33 = vadd.f32 %v1388_v32, %v1387_v27  ;;  %v1452_v34 = vpop.f32.mrb[23].mxu1 }
 0x128   : > { %v1453_v35 = vadd.f32 %v1452_v34, %v1451_v31  ;;  %v959_v36 = vadd.f32 %v1450_v30, %v1386_v25 }
 0x12a   : > { %v962_v37 = vadd.f32 %v1453_v35, %v1389_v33 }
 0x12b   : > { %v1390_v38 = vpop.f32.mrb[24].mxu0 }
 0x12c   : > { %v1454_v39 = vpop.f32.mrb[24].mxu1  ;;  %v1391_v40 = vpop.f32.mrb[25].mxu0 }
 0x12d   : > { %v1392_v41 = vadd.f32 %v1391_v40, %v1390_v38  ;;  %v1455_v44 = vpop.f32.mrb[25].mxu1  ;;  %v1393_v45 = vpop.f32.mrb[26].mxu0 }
 0x12e   : > { %v1456_v46 = vadd.f32 %v1455_v44, %v1454_v39  ;;  %v1457_v47 = vpop.f32.mrb[26].mxu1  ;;  %v1394_v48 = vpop.f32.mrb[27].mxu0 }
 0x12f   : > { %v1395_v49 = vadd.f32 %v1394_v48, %v1393_v45  ;;  %v1458_v50 = vpop.f32.mrb[27].mxu1 }
 0x130   : > { %v1459_v51 = vadd.f32 %v1458_v50, %v1457_v47  ;;  %v967_v52 = vadd.f32 %v1456_v46, %v1392_v41 }
 0x132   : > { %v1902_v53 = vadd.f32 %v1459_v51, %v1395_v49 }
 0x133   : > { %v1396_v54 = vpop.f32.mrb[28].mxu0 }
 0x134   : > { %v1460_v55 = vpop.f32.mrb[28].mxu1  ;;  %v1397_v58 = vpop.f32.mrb[29].mxu0 }
 0x135   : > { %v1398_v59 = vadd.f32 %v1397_v58, %v1396_v54  ;;  %v1461_v60 = vpop.f32.mrb[29].mxu1  ;;  %v1399_v61 = vpop.f32.mrb[30].mxu0 }
 0x136   : > { %v1462_v62 = vadd.f32 %v1461_v60, %v1460_v55  ;;  %v1463_v63 = vpop.f32.mrb[30].mxu1  ;;  %v1400_v0 = vpop.f32.mrb[31].mxu0 }
 0x137   : > { %v1401_v1 = vadd.f32 %v1400_v0, %v1399_v61  ;;  %v1464_v2 = vpop.f32.mrb[31].mxu1 }
 0x138   : > { %v1465_v3 = vadd.f32 %v1464_v2, %v1463_v63  ;;  %v975_v4 = vadd.f32 %v1462_v62, %v1398_v59 }
 0x13a   : > { %v978_v5 = vadd.f32 %v1465_v3, %v1401_v1 }
 0x13b   : > { %v1500_v8 = vpop.f32.mrb[32].mxu0 }
 0x13c   : > { %v1024_v10 = vadd.f32 %v1500_v8, %v1888_v42  ;;  %v1508_v11 = vpop.f32.mrb[32].mxu1  ;;  %v1015_v12 = vpop.f32.mrb[33].mxu0 }
 0x13d   : > { %v1056_v13 = vadd.f32 %v1508_v11, %v959_v36  ;;  %v1016_v14 = vadd.f32 %v1015_v12, %v1884_v28  ;;  %v1047_v15 = vpop.f32.mrb[33].mxu1  ;;  %v1501_v16 = vpop.f32.mrb[34].mxu0 }
 0x13e   : > { %v1091_v17 = vadd.f32 %v1335_v9, %v1024_v10  ;;  %v1048_v18 = vadd.f32 %v1047_v15, %v951_v20  ;;  %v1027_v19 = vadd.f32 %v1501_v16, %v1890_v43  ;;  %v1509_v42 = vpop.f32.mrb[34].mxu1  ;;  %v1018_v22 = vpop.f32.mrb[35].mxu0 }
 0x13f   : > { %v1099_v23 = vadd.f32 %v1335_v9, %v1056_v13  ;;  %v1089_v24 = vadd.f32 %v1335_v9, %v1016_v14  ;;  %v1059_v25 = vadd.f32 %v1509_v42, %v962_v37  ;;  %v1019_v26 = vadd.f32 %v1018_v22, %v1886_v29  ;;  %v1050_v28 = vpop.f32.mrb[35].mxu1 }
 0x140   : > { %1107 = vst [vmem:[%s1912_s9 + $0x10] sm:$0xff] %v1091_v17  ;;  %v1097_v27 = vadd.f32 %v1335_v9, %v1048_v18  ;;  %v1092_v30 = vadd.f32 %v1335_v9, %v1027_v19  ;;  %v1051_v20 = vadd.f32 %v1050_v28, %v1900_v21 }
 0x141   : > { %1115 = vst [vmem:[%s1912_s9 + $0x50] sm:$0xff] %v1099_v23  ;;  %1105 = vst [vmem:[%s1912_s9] sm:$0xff] %v1089_v24  ;;  %v1100_v43 = vadd.f32 %v1335_v9, %v1059_v25  ;;  %v1090_v31 = vadd.f32 %v1335_v9, %v1019_v26 }
 0x142   : > { %1113 = vst [vmem:[%s1912_s9 + $0x40] sm:$0xff] %v1097_v27  ;;  %1108 = vst [vmem:[%s1912_s9 + $0x18] sm:$0xff] %v1092_v30  ;;  %v1098_v32 = vadd.f32 %v1335_v9, %v1051_v20 }
 0x143   : > { %1116 = vst [vmem:[%s1912_s9 + $0x58] sm:$0xff] %v1100_v43  ;;  %1106 = vst [vmem:[%s1912_s9 + $0x8] sm:$0xff] %v1090_v31  ;;  %v1504_v33 = vpop.f32.mrb[36].mxu0 }
 0x144   : > { %1114 = vst [vmem:[%s1912_s9 + $0x48] sm:$0xff] %v1098_v32  ;;  %v1040_v29 = vadd.f32 %v1504_v33, %v1896_v6  ;;  %v1512_v34 = vpop.f32.mrb[36].mxu1  ;;  %v1031_v35 = vpop.f32.mrb[37].mxu0 }
 0x145   : > { %v1072_v36 = vadd.f32 %v1512_v34, %v975_v4  ;;  %v1032_v37 = vadd.f32 %v1031_v35, %v1892_v56  ;;  %v1063_v21 = vpop.f32.mrb[37].mxu1  ;;  %v1505_v38 = vpop.f32.mrb[38].mxu0 }
 0x146   : > { %v1095_v39 = vadd.f32 %v1335_v9, %v1040_v29  ;;  %v1064_v40 = vadd.f32 %v1063_v21, %v967_v52  ;;  %v1043_v41 = vadd.f32 %v1505_v38, %v1898_v7  ;;  %v1513_v44 = vpop.f32.mrb[38].mxu1  ;;  %v1034_v45 = vpop.f32.mrb[39].mxu0 }
 0x147   : > { %v1103_v46 = vadd.f32 %v1335_v9, %v1072_v36  ;;  %v1093_v6 = vadd.f32 %v1335_v9, %v1032_v37  ;;  %v1075_v47 = vadd.f32 %v1513_v44, %v978_v5  ;;  %v1035_v56 = vadd.f32 %v1034_v45, %v1894_v57  ;;  %v1066_v48 = vpop.f32.mrb[39].mxu1 }
 0x148   : > { %1111 = vst [vmem:[%s1912_s9 + $0x30] sm:$0xff] %v1095_v39  ;;  %v1101_v49 = vadd.f32 %v1335_v9, %v1064_v40  ;;  %v1096_v50 = vadd.f32 %v1335_v9, %v1043_v41  ;;  %v1067_v51 = vadd.f32 %v1066_v48, %v1902_v53 }
 0x149   : > { %1119 = vst [vmem:[%s1912_s9 + $0x70] sm:$0xff] %v1103_v46  ;;  %1109 = vst [vmem:[%s1912_s9 + $0x20] sm:$0xff] %v1093_v6  ;;  %v1104_v7 = vadd.f32 %v1335_v9, %v1075_v47  ;;  %v1094_v52 = vadd.f32 %v1335_v9, %v1035_v56 }
 0x14a   : > { %1117 = vst [vmem:[%s1912_s9 + $0x60] sm:$0xff] %v1101_v49  ;;  %1112 = vst [vmem:[%s1912_s9 + $0x38] sm:$0xff] %v1096_v50  ;;  %v1102_v54 = vadd.f32 %v1335_v9, %v1067_v51 }
 0x14b   : > { %1120 = vst [vmem:[%s1912_s9 + $0x78] sm:$0xff] %v1104_v7  ;;  %1110 = vst [vmem:[%s1912_s9 + $0x28] sm:$0xff] %v1094_v52 }
 0x14c   : > { %1118 = vst [vmem:[%s1912_s9 + $0x68] sm:$0xff] %v1102_v54 }
 0x14d PF: > { %s13_s14 = sadd.s32 1, %s1673_s14   ;;  %s1952_s12 = smov %s1669_s13 }
 0x14e   : > { %p10_p5 = scmp.ge.s32.totalorder %s13_s14, 7   ;;  %s1953_s13 = smov %s1955_s15 }
 0x150   :  { %12 = sbr.rel (!%p10_p5) target bundleno = 2 (0x2), region = 71 }

</bundles_post_ra>
